<compile_context>
chip_gen: v5e
topology: v5e:2x2
jax: 0.10.0
libtpu: 0.0.40
codegen_flags: <defaults>
</compile_context>

<pallas_src>
import jax
import jax.numpy as jnp
from jax.experimental import pallas as pl
from jax.experimental.pallas import tpu as pltpu


def _round_up(x, m):
    return (x + m - 1) // m * m


def _cdiv(a, b):
    return (a + b - 1) // b


def _actor_kernel(x_ref, w1_ref, b1_ref, w2_ref, b2_ref, w3_ref, b3_ref, o_ref):
    # x cast folded into the kernel (no wrapper-side XLA cast pass over x).
    x = x_ref[...].astype(w1_ref.dtype)

    # ---- hidden layer 1: Linear(state_dim -> hidden) + ReLU (MXU + VPU) ----
    h = jnp.dot(x, w1_ref[...], preferred_element_type=jnp.float32)
    h = jnp.maximum(h + b1_ref[...], 0.0)          # b1 (1, hidden) broadcasts

    # ---- hidden layer 2: Linear(hidden -> hidden) + ReLU ----
    h = jnp.dot(h.astype(w2_ref.dtype), w2_ref[...],
                preferred_element_type=jnp.float32)
    h = jnp.maximum(h + b2_ref[...], 0.0)

    # ---- output head: Linear(hidden -> action_dim padded to 128 lanes) ----
    logits = jnp.dot(h.astype(w3_ref.dtype), w3_ref[...],
                     preferred_element_type=jnp.float32)
    logits = logits + b3_ref[...]                  # padded lanes carry -1e30 bias

    # ---- softmax over the lane-dense action axis, in f32 ----
    m = jnp.max(logits, axis=-1, keepdims=True)    # XLU lane reduce
    e = jnp.exp(logits - m)                        # EUP; padded lanes -> exactly 0
    denom = jnp.sum(e, axis=-1, keepdims=True)
    inv = pl.reciprocal(denom, approx=False)       # per-row reciprocal, then vmul
    o_ref[...] = (e * inv).astype(o_ref.dtype)     # lane-dense store


def prepare_params(params, *, compute_dtype=jnp.bfloat16):
    """One-time weight prep: cast to compute dtype, pad head to lane-dense 128.

    Hoisted out of the per-call path -- for tiny RL batches the surrounding XLA
    ops (cast/pad) would otherwise dominate wall time.
    """
    w1, b1, w2, b2, w3, b3 = params
    action_dim = int(w3.shape[1])
    a_pad = _round_up(action_dim, 128)
    b3 = b3.reshape(1, -1)
    if a_pad != action_dim:
        w3 = jnp.pad(w3, ((0, 0), (0, a_pad - action_dim)))
        # -1e30 bias on padded lanes => exp() underflows to exactly 0, so the
        # real lanes normalize as if the padding were absent. (Biases stay f32;
        # the sentinel would break if b3 were streamed in a narrower dtype.)
        b3 = jnp.pad(b3, ((0, 0), (0, a_pad - action_dim)),
                     constant_values=-1e30)
    w1c, w2c, w3c = (w.astype(compute_dtype) for w in (w1, w2, w3))
    b1f = b1.reshape(1, -1).astype(jnp.float32)
    b2f = b2.reshape(1, -1).astype(jnp.float32)
    b3f = b3.astype(jnp.float32)
    return {
        "weights": (w1c, b1f, w2c, b2f, w3c, b3f),
        "action_dim": action_dim,
        "a_pad": a_pad,
        "compute_dtype": jnp.dtype(compute_dtype),
    }


def discrete_actor_forward(x, prepped, *, block_batch=None, out_dtype=None,
                           padded_output=False):
    """Fused actor MLP: x (B, state_dim) -> action probabilities.

    Returns (B, action_dim), or the padded (B, a_pad) buffer (extra lanes are
    exactly 0) when padded_output=True.
    """
    w1c, b1f, w2c, b2f, w3c, b3f = prepped["weights"]
    action_dim = prepped["action_dim"]
    a_pad = prepped["a_pad"]
    compute_dtype = prepped["compute_dtype"]

    B, state_dim = x.shape
    if out_dtype is None:
        out_dtype = compute_dtype          # bf16 output halves writeback traffic
    out_dtype = jnp.dtype(out_dtype)

    # ---- sublane packing for the narrowest streamed dtype ----
    min_item = min(out_dtype.itemsize, compute_dtype.itemsize, x.dtype.itemsize)
    sub = 8 * max(1, 4 // min_item)        # 8 (f32), 16 (bf16), 32 (8-bit)

    # ---- batch tile: big tiles to amortize per-step overhead, but >= 2 grid
    # steps on large batches so v7x's 2-TC megacore shards the batch axis ----
    if block_batch is None:
        if B >= 512:
            block_batch = min(1024, _round_up(_cdiv(B, 2), sub))
        else:
            block_batch = _round_up(max(B, sub), sub)
    block_batch = max(sub, _round_up(int(block_batch), sub))
    grid_b = _cdiv(B, block_batch)         # ragged last block handled by Pallas

    hidden = max(w1c.shape[1], w2c.shape[1])

    # ---- VMEM budget from the actual tiles: double-buffered x/out, resident
    # (double-buffered) weights, f32 h/logits/exp intermediates, small slack.
    # Capped at 48 MiB (v7x has 64 MiB per TC). ----
    x_tile = block_batch * state_dim * x.dtype.itemsize
    o_tile = block_batch * a_pad * out_dtype.itemsize
    w_bytes = sum(int(a.size) * a.dtype.itemsize for a in prepped["weights"])
    inter = block_batch * (2 * hidden + 3 * a_pad) * 4
    vmem_bytes = int(2 * (x_tile + o_tile) + 2 * w_bytes + inter + (2 << 20))
    vmem_bytes = int(min(max(vmem_bytes, 8 << 20), 48 << 20))

    full = lambda arr: pl.BlockSpec(arr.shape, lambda i: (0,) * arr.ndim)

    out = pl.pallas_call(
        _actor_kernel,
        out_shape=jax.ShapeDtypeStruct((B, a_pad), out_dtype),
        grid_spec=pltpu.PrefetchScalarGridSpec(
            num_scalar_prefetch=0,
            grid=(grid_b,),
            in_specs=[
                pl.BlockSpec((block_batch, state_dim), lambda i: (i, 0)),
                full(w1c), full(b1f), full(w2c), full(b2f), full(w3c), full(b3f),
            ],
            out_specs=pl.BlockSpec((block_batch, a_pad), lambda i: (i, 0)),
        ),
        compiler_params=pltpu.CompilerParams(
            dimension_semantics=("parallel",),
            vmem_limit_bytes=vmem_bytes,
        ),
    )(x, w1c, b1f, w2c, b2f, w3c, b3f)

    if padded_output:
        return out
    return out[:, :action_dim]


def init_params(key, state_dim, action_dim, hidden_dim=64):
    """Deterministic params mirroring DiscreteActor(state_dim, action_dim, hidden_dim).

    PyTorch Linear stores W as (out, in); we keep the transpose (in, out) so
    the kernel computes x @ W directly.
    """
    ks = jax.random.split(key, 6)
    s = 0.1
    w1 = s * jax.random.normal(ks[0], (state_dim, hidden_dim), jnp.float32)
    b1 = s * jax.random.normal(ks[1], (1, hidden_dim), jnp.float32)
    w2 = s * jax.random.normal(ks[2], (hidden_dim, hidden_dim), jnp.float32)
    b2 = s * jax.random.normal(ks[3], (1, hidden_dim), jnp.float32)
    w3 = s * jax.random.normal(ks[4], (hidden_dim, action_dim), jnp.float32)
    b3 = s * jax.random.normal(ks[5], (1, action_dim), jnp.float32)
    return (w1, b1, w2, b2, w3, b3)


def reference_forward(x, params):
    """Plain-JAX reference matching the PyTorch forward (softmax policy)."""
    w1, b1, w2, b2, w3, b3 = params
    h = jnp.maximum(x @ w1 + b1, 0.0)
    h = jnp.maximum(h @ w2 + b2, 0.0)
    return jax.nn.softmax(h @ w3 + b3, axis=-1)


if __name__ == "__main__":
    key = jax.random.PRNGKey(0)
    kx, kp, kr, kb = jax.random.split(key, 4)

    batch, state_dim, hidden_dim, action_dim = 8, 32, 64, 6
    x = jax.random.normal(kx, (batch, state_dim), jnp.float32)
    params = init_params(kp, state_dim, action_dim, hidden_dim)
    ref = reference_forward(x, params)

    # ---- exact-precision path (f32 end to end): tight tolerance ----
    prepped_f32 = prepare_params(params, compute_dtype=jnp.float32)
    out_f32 = jax.block_until_ready(discrete_actor_forward(x, prepped_f32))
    assert out_f32.shape == (batch, action_dim), out_f32.shape
    assert jnp.allclose(out_f32, ref, atol=1e-5, rtol=1e-5), (
        f"f32 max abs err {jnp.max(jnp.abs(out_f32 - ref))}")
    assert jnp.allclose(jnp.sum(out_f32, axis=-1), 1.0, atol=1e-5)

    # ---- perf path (bf16 stream + bf16 output, f32 accumulation) ----
    prepped_bf16 = prepare_params(params, compute_dtype=jnp.bfloat16)
    out_bf16 = jax.block_until_ready(discrete_actor_forward(x, prepped_bf16))
    assert out_bf16.shape == (batch, action_dim), out_bf16.shape
    assert out_bf16.dtype == jnp.bfloat16, out_bf16.dtype
    assert jnp.allclose(out_bf16.astype(jnp.float32), ref, atol=3e-2), (
        f"bf16 max abs err {jnp.max(jnp.abs(out_bf16.astype(jnp.float32) - ref))}")

    # ---- ragged batch + multi-step grid (partial last block, no jnp.pad) ----
    x_r = jax.random.normal(kr, (batch + 3, state_dim), jnp.float32)
    out_r = jax.block_until_ready(
        discrete_actor_forward(x_r, prepped_f32, block_batch=8))
    ref_r = reference_forward(x_r, params)
    assert out_r.shape == (batch + 3, action_dim), out_r.shape
    assert jnp.allclose(out_r, ref_r, atol=1e-5, rtol=1e-5), (
        f"ragged max abs err {jnp.max(jnp.abs(out_r - ref_r))}")

    # ---- larger batch: default tile picker -> >=2 parallel grid steps,
    #      padded output consumed directly (padded lanes exactly 0) ----
    xb = jax.random.normal(kb, (600, state_dim), jnp.float32)
    out_b = jax.block_until_ready(
        discrete_actor_forward(xb, prepped_f32, padded_output=True))
    ref_b = reference_forward(xb, params)
    assert out_b.shape == (600, 128), out_b.shape
    assert jnp.allclose(out_b[:, :action_dim], ref_b, atol=1e-5, rtol=1e-5), (
        f"big-batch max abs err {jnp.max(jnp.abs(out_b[:, :action_dim] - ref_b))}")
    assert jnp.allclose(out_b[:, action_dim:], 0.0)

    print("KERNEL_OK")
</pallas_src>

<mosaic_0001>
module attributes {stable_mosaic.version = 11 : i64} {
  func.func @_actor_kernel(%arg0: i32, %arg1: memref<8x32xf32, #tpu.memory_space<vmem>>, %arg2: memref<32x64xf32, #tpu.memory_space<vmem>>, %arg3: memref<1x64xf32, #tpu.memory_space<vmem>>, %arg4: memref<64x64xf32, #tpu.memory_space<vmem>>, %arg5: memref<1x64xf32, #tpu.memory_space<vmem>>, %arg6: memref<64x128xf32, #tpu.memory_space<vmem>>, %arg7: memref<1x128xf32, #tpu.memory_space<vmem>>, %arg8: memref<8x128xf32, #tpu.memory_space<vmem>>) attributes {dimension_semantics = [#tpu.dimension_semantics<parallel>], iteration_bounds = array<i64: 1>, scalar_prefetch = 0 : i64, scratch_operands = 0 : i64, tpu.core_type = #tpu.core_type<tc>, window_params = [{transform_indices = @transform_0, window_bounds = array<i64: 8, 32>}, {pipeline_mode = #tpu.pipeline_mode<synchronous>, transform_indices = @transform_1, window_bounds = array<i64: 32, 64>}, {pipeline_mode = #tpu.pipeline_mode<synchronous>, transform_indices = @transform_2, window_bounds = array<i64: 1, 64>}, {pipeline_mode = #tpu.pipeline_mode<synchronous>, transform_indices = @transform_3, window_bounds = array<i64: 64, 64>}, {pipeline_mode = #tpu.pipeline_mode<synchronous>, transform_indices = @transform_4, window_bounds = array<i64: 1, 64>}, {pipeline_mode = #tpu.pipeline_mode<synchronous>, transform_indices = @transform_5, window_bounds = array<i64: 64, 128>}, {pipeline_mode = #tpu.pipeline_mode<synchronous>, transform_indices = @transform_6, window_bounds = array<i64: 1, 128>}, {transform_indices = @transform_7, window_bounds = array<i64: 8, 128>}]} {
    %c0 = arith.constant 0 : index
    %c0_0 = arith.constant 0 : index
    %0 = vector.load %arg1[%c0, %c0_0] : memref<8x32xf32, #tpu.memory_space<vmem>>, vector<8x32xf32>
    %c0_1 = arith.constant 0 : index
    %c0_2 = arith.constant 0 : index
    %1 = vector.load %arg2[%c0_1, %c0_2] : memref<32x64xf32, #tpu.memory_space<vmem>>, vector<32x64xf32>
    %cst = arith.constant dense<0.000000e+00> : vector<8x64xf32>
    %2 = tpu.matmul %0, %1, %cst {dimension_numbers = #tpu.dot_dimension_numbers<[1], [0], [0], [1], [0, 0, 1, 1], [], []>} : vector<8x32xf32>, vector<32x64xf32>, vector<8x64xf32> -> vector<8x64xf32>
    %c0_3 = arith.constant 0 : index
    %c0_4 = arith.constant 0 : index
    %3 = vector.load %arg3[%c0_3, %c0_4] : memref<1x64xf32, #tpu.memory_space<vmem>>, vector<1x64xf32>
    %4 = vector.broadcast %3 : vector<1x64xf32> to vector<8x64xf32>
    %5 = arith.addf %2, %4 : vector<8x64xf32>
    %cst_5 = arith.constant 0.000000e+00 : f32
    %6 = vector.broadcast %cst_5 : f32 to vector<8x64xf32>
    %7 = arith.maximumf %5, %6 : vector<8x64xf32>
    %c0_6 = arith.constant 0 : index
    %c0_7 = arith.constant 0 : index
    %8 = vector.load %arg4[%c0_6, %c0_7] : memref<64x64xf32, #tpu.memory_space<vmem>>, vector<64x64xf32>
    %cst_8 = arith.constant dense<0.000000e+00> : vector<8x64xf32>
    %9 = tpu.matmul %7, %8, %cst_8 {dimension_numbers = #tpu.dot_dimension_numbers<[1], [0], [0], [1], [0, 0, 1, 1], [], []>} : vector<8x64xf32>, vector<64x64xf32>, vector<8x64xf32> -> vector<8x64xf32>
    %c0_9 = arith.constant 0 : index
    %c0_10 = arith.constant 0 : index
    %10 = vector.load %arg5[%c0_9, %c0_10] : memref<1x64xf32, #tpu.memory_space<vmem>>, vector<1x64xf32>
    %11 = vector.broadcast %10 : vector<1x64xf32> to vector<8x64xf32>
    %12 = arith.addf %9, %11 : vector<8x64xf32>
    %cst_11 = arith.constant 0.000000e+00 : f32
    %13 = vector.broadcast %cst_11 : f32 to vector<8x64xf32>
    %14 = arith.maximumf %12, %13 : vector<8x64xf32>
    %c0_12 = arith.constant 0 : index
    %c0_13 = arith.constant 0 : index
    %15 = vector.load %arg6[%c0_12, %c0_13] : memref<64x128xf32, #tpu.memory_space<vmem>>, vector<64x128xf32>
    %cst_14 = arith.constant dense<0.000000e+00> : vector<8x128xf32>
    %16 = tpu.matmul %14, %15, %cst_14 {dimension_numbers = #tpu.dot_dimension_numbers<[1], [0], [0], [1], [0, 0, 1, 1], [], []>} : vector<8x64xf32>, vector<64x128xf32>, vector<8x128xf32> -> vector<8x128xf32>
    %c0_15 = arith.constant 0 : index
    %c0_16 = arith.constant 0 : index
    %17 = vector.load %arg7[%c0_15, %c0_16] : memref<1x128xf32, #tpu.memory_space<vmem>>, vector<1x128xf32>
    %18 = vector.broadcast %17 : vector<1x128xf32> to vector<8x128xf32>
    %19 = arith.addf %16, %18 : vector<8x128xf32>
    %cst_17 = arith.constant dense<0xFF800000> : vector<8xf32>
    %20 = vector.multi_reduction <maximumf>, %19, %cst_17 [1] : vector<8x128xf32> to vector<8xf32>
    %21 = vector.shape_cast %20 : vector<8xf32> to vector<8x1xf32>
    %22 = vector.broadcast %21 : vector<8x1xf32> to vector<8x128xf32>
    %23 = arith.subf %19, %22 : vector<8x128xf32>
    %24 = math.exp %23 : vector<8x128xf32>
    %cst_18 = arith.constant dense<0.000000e+00> : vector<8xf32>
    %25 = vector.multi_reduction <add>, %24, %cst_18 [1] : vector<8x128xf32> to vector<8xf32>
    %26 = vector.shape_cast %25 : vector<8xf32> to vector<8x1xf32>
    %27 = tpu.reciprocal %26 : vector<8x1xf32> -> vector<8x1xf32>
    %28 = vector.broadcast %27 : vector<8x1xf32> to vector<8x128xf32>
    %29 = arith.mulf %24, %28 : vector<8x128xf32>
    %c0_19 = arith.constant 0 : index
    %c0_20 = arith.constant 0 : index
    %30 = vector.load %arg8[%c0_19, %c0_20] : memref<8x128xf32, #tpu.memory_space<vmem>>, vector<8x128xf32>
    tpu.vector_store %arg8[%c0_19, %c0_20], %29 {strides = array<i32>} : memref<8x128xf32, #tpu.memory_space<vmem>>, vector<8x128xf32>,
    return
  }
  func.func @transform_0(%arg0: i32) -> (i32, i32) {
    %c0_i32 = arith.constant 0 : i32
    %c0_i32_0 = arith.constant 0 : i32
    return %arg0, %c0_i32 : i32, i32
  }
  func.func @transform_1(%arg0: i32) -> (i32, i32) {
    %c0_i32 = arith.constant 0 : i32
    %c0_i32_0 = arith.constant 0 : i32
    %c0_i32_1 = arith.constant 0 : i32
    return %c0_i32, %c0_i32_0 : i32, i32
  }
  func.func @transform_2(%arg0: i32) -> (i32, i32) {
    %c0_i32 = arith.constant 0 : i32
    %c0_i32_0 = arith.constant 0 : i32
    %c0_i32_1 = arith.constant 0 : i32
    return %c0_i32, %c0_i32_0 : i32, i32
  }
  func.func @transform_3(%arg0: i32) -> (i32, i32) {
    %c0_i32 = arith.constant 0 : i32
    %c0_i32_0 = arith.constant 0 : i32
    %c0_i32_1 = arith.constant 0 : i32
    return %c0_i32, %c0_i32_0 : i32, i32
  }
  func.func @transform_4(%arg0: i32) -> (i32, i32) {
    %c0_i32 = arith.constant 0 : i32
    %c0_i32_0 = arith.constant 0 : i32
    %c0_i32_1 = arith.constant 0 : i32
    return %c0_i32, %c0_i32_0 : i32, i32
  }
  func.func @transform_5(%arg0: i32) -> (i32, i32) {
    %c0_i32 = arith.constant 0 : i32
    %c0_i32_0 = arith.constant 0 : i32
    %c0_i32_1 = arith.constant 0 : i32
    return %c0_i32, %c0_i32_0 : i32, i32
  }
  func.func @transform_6(%arg0: i32) -> (i32, i32) {
    %c0_i32 = arith.constant 0 : i32
    %c0_i32_0 = arith.constant 0 : i32
    %c0_i32_1 = arith.constant 0 : i32
    return %c0_i32, %c0_i32_0 : i32, i32
  }
  func.func @transform_7(%arg0: i32) -> (i32, i32) {
    %c0_i32 = arith.constant 0 : i32
    %c0_i32_0 = arith.constant 0 : i32
    return %arg0, %c0_i32 : i32, i32
  }
}

</mosaic_0001>

<bundles_post_ra>
// kernel: tpu_custom_call.1
= control target key start
LH: loop header
LB: loop body
LE: loop exit
PB: predicated region body
PF: predicated region fallthrough
CT: control target
= control target key end

     0   :  { %12 = vsyncpa [#allocation3], 0  ;;  %s452_s0 = inlined_call_operand.hbm [shape: f32[8,32], index: 0, kind: input, shape index: {}]   ;;  %s453_s1 = inlined_call_operand.hbm [shape: f32[32,64], index: 1, kind: input, shape index: {}]   ;;  %s454_s2 = inlined_call_operand.vmem [shape: f32[1,64], index: 2, kind: input, shape index: {}]   ;;  %s455_s3 = inlined_call_operand.hbm [shape: f32[64,64], index: 3, kind: input, shape index: {}]   ;;  %s456_s4 = inlined_call_operand.vmem [shape: f32[1,64], index: 4, kind: input, shape index: {}]   ;;  %s457_s5 = inlined_call_operand.hbm [shape: f32[64,128], index: 5, kind: input, shape index: {}]   ;;  %s458_s6 = inlined_call_operand.vmem [shape: f32[1,128], index: 6, kind: input, shape index: {}]   ;;  %s459_s7 = inlined_call_operand.hbm [shape: f32[8,128], index: 7, kind: output, shape index: {}]  }
   0x1   :  { %13 = vsyncpa [#allocation6], 0 }
   0x2   :  { %14 = vsyncpa [#allocation9], 0  ;;  %s31_s26 = sshll.u32 %s453_s1, 4  ;;  %s32_s26 = int_to_ptr.hbm [resolvable:$true] %s31_s26 }
   0x3   :  { %15 = vsyncpa [#allocation4], 0  ;;  %s381_s27 = smov [#allocation5]   ;;  %s21_s8 = sshll.u32 %s452_s0, 4  ;;  %s22_s8 = int_to_ptr.hbm [resolvable:$true] %s21_s8 }
   0x4   :  { %s33_s28 = sshll.u32 %s381_s27, 4  ;;  %s382_s9 = smov 128   ;;  %s34_s28 = int_to_ptr.vmem [resolvable:$true] %s33_s28 }
   0x5   :  { %s383_s10 = smov 8   ;;  %s384_s11 = smov [#allocation2]  }
   0x6   :  { %39 = dma.hbm_to_vmem [thread:$0]  %s32_s26, 512, %s34_s28, [#allocation6], %s382_s9, %s382_s9, %s383_s10  }
   0x7   :  { %s23_s12 = sshll.u32 %s384_s11, 4  ;;  %s46_s15 = sshll.u32 %s455_s3, 4  ;;  %s24_s12 = int_to_ptr.vmem [resolvable:$true] %s23_s12  ;;  %s47_s15 = int_to_ptr.hbm [resolvable:$true] %s46_s15 }
   0x8   :  { %26 = dma.hbm_to_vmem [thread:$0]  %s22_s8, 128, %s24_s12, [#allocation3]  }
   0x9   :  { %s61_s17 = sshll.u32 %s457_s5, 4  ;;  %s385_s18 = smov [#allocation7]   ;;  %s62_s17 = int_to_ptr.hbm [resolvable:$true] %s61_s17 }
   0xa   :  { %s48_s19 = sshll.u32 %s385_s18, 4  ;;  %s386_s0 = smov [#allocation8]   ;;  %s49_s19 = int_to_ptr.vmem [resolvable:$true] %s48_s19 }
   0xb   :  { %54 = dma.hbm_to_vmem [thread:$0]  %s47_s15, 1024, %s49_s19, [#allocation6], %s382_s9, %s382_s9, %s383_s10  }
   0xc   :  { %s63_s20 = sshll.u32 %s386_s0, 4  ;;  %s64_s20 = int_to_ptr.vmem [resolvable:$true] %s63_s20 }
   0xd   :  { %69 = dma.hbm_to_vmem [thread:$0]  %s62_s17, 1024, %s64_s20, [#allocation9], %s382_s9, %s382_s9, %s383_s10  }
   0xe   :  { %373 = dma.done.wait [#allocation3], 128  }
   0xf   :  { %374 = vsyncadd [#allocation3], 4294967168 }
  0x10   :  { %375 = dma.done.wait [#allocation6], 1536  }
  0x11   :  { %376 = vsyncadd [#allocation6], 4294965760 }
  0x12   :  { %377 = dma.done.wait [#allocation9], 1024  }
  0x13   :  { %378 = vsyncadd [#allocation9], 4294966272  ;;  %v92_v0 = vld [vmem:[#allocation5 + $0x18] sm:$0xff]  ;;  %v91_v1 = vld [vmem:[#allocation5 + $0x10] sm:$0xff]  ;;  %vm97_vm0 = vcmask 261120   ;;  %vm134_vm1 = vcmask 523264  }
  0x14   :  { %113 = vmatpush.msra.mxu0 %v92_v0  ;;  %v129_v2 = vld [vmem:[#allocation7 + $0x38] sm:$0xff]  ;;  %v90_v3 = vld [vmem:[#allocation5 + $0x8] sm:$0xff]  ;;  %v128_v4 = vld [vmem:[#allocation7 + $0x30] sm:$0xff]  ;;  %s224_s26 = sshll.u32 %s459_s7, 4  ;;  %s225_s26 = int_to_ptr.hbm [resolvable:$true] %s224_s26 }
  0x15   :  { %146 = vmatpush.msra.mxu1 %v129_v2  ;;  %v127_v5 = vld [vmem:[#allocation7 + $0x28] sm:$0xff]  ;;  %v89_v6 = vld [vmem:[#allocation5] sm:$0xff]  ;;  %v88_v7 = vld [vmem:[#allocation2] sm:$0xff] }
  0x16   :  { %114 = vmatpush.msra.mxu0 %v91_v1  ;;  %v126_v8 = vld [vmem:[#allocation7 + $0x20] sm:$0xff]  ;;  %v125_v9 = vld [vmem:[#allocation7 + $0x18] sm:$0xff]  ;;  %v124_v10 = vld [vmem:[#allocation7 + $0x10] sm:$0xff] }
  0x17   :  { %147 = vmatpush.msra.mxu1 %v128_v4  ;;  %v123_v11 = vld [vmem:[#allocation7 + $0x8] sm:$0xff]  ;;  %v122_v12 = vld [vmem:[#allocation7] sm:$0xff]  ;;  %v166_v13 = vld [vmem:[#allocation8 + $0x38] sm:$0xff] }
  0x18   :  { %115 = vmatpush.msra.mxu0 %v90_v3  ;;  %v165_v14 = vld [vmem:[#allocation8 + $0x30] sm:$0xff]  ;;  %182 = vmatpush.msra.mxu2 %v166_v13  ;;  %v164_v15 = vld [vmem:[#allocation8 + $0x28] sm:$0xff]  ;;  %v163_v16 = vld [vmem:[#allocation8 + $0x20] sm:$0xff] }
  0x19   :  { %148 = vmatpush.msra.mxu1 %v127_v5  ;;  %v162_v17 = vld [vmem:[#allocation8 + $0x18] sm:$0xff]  ;;  %v161_v22 = vld [vmem:[#allocation8 + $0x10] sm:$0xff]  ;;  %v160_v23 = vld [vmem:[#allocation8 + $0x8] sm:$0xff] }
  0x1a   :  { %116 = vmatpush.msra.mxu0 %v89_v6  ;;  %183 = vmatpush.msra.mxu2 %v165_v14  ;;  %v246_v18 = vld [vmem:[%s454_s2] ss:$0 sm:$0xff]  ;;  %v159_v24 = vld [vmem:[#allocation8] sm:$0xff] }
  0x1b   :  { %236 = vmatmul.msk.f32.vlgmr.msra.gmra.mxu0 %vm97_vm0, %v88_v7  ;;  %149 = vmatpush.msra.mxu1 %v126_v8  ;;  %v247_v25 = vld [vmem:[%s456_s4] ss:$0 sm:$0xff]  ;;  %s387_s4 = smov [#allocation10]  }
  0x1c   :  { %184 = vmatpush.msra.mxu2 %v164_v15  ;;  %v248_v29 = vld [vmem:[%s458_s6] ss:$0 sm:$0xff]  ;;  %s222_s6 = sshll.u32 %s387_s4, 4  ;;  %s223_s6 = int_to_ptr.vmem [resolvable:$true] %s222_s6 }
  0x1d   :  { %150 = vmatpush.msra.mxu1 %v125_v9 }
  0x1e   :  { %185 = vmatpush.msra.mxu2 %v163_v16 }
  0x1f   :  { %151 = vmatpush.msra.mxu1 %v124_v10 }
  0x20   :  { %186 = vmatpush.msra.mxu2 %v162_v17 }
  0x21   :  { %152 = vmatpush.msra.mxu1 %v123_v11 }
  0x22   :  { %187 = vmatpush.msra.mxu2 %v161_v22 }
  0x23   :  { %153 = vmatpush.msra.mxu1 %v122_v12 }
  0x24   :  { %188 = vmatpush.msra.mxu2 %v160_v23 }
  0x26   :  { %189 = vmatpush.msra.mxu2 %v159_v24 }
  0x98   :  { %v118_v19 = vpop.f32.mrf.mxu0 }
  0x99   :  { %v119_v20 = vadd.f32 %v246_v18, %v118_v19 }
  0x9b   :  { %v121_v21 = vmax.f32 %v119_v20, 0.0 }
  0x9d   :  { %237 = vmatmul.msk.f32.vlgmr.msra.gmra.mxu1 %vm134_vm1, %v121_v21 }
 0x11a   :  { %v155_v26 = vpop.f32.mrf.mxu1 }
 0x11b   :  { %v156_v27 = vadd.f32 %v247_v25, %v155_v26 }
 0x11d   :  { %v158_v28 = vmax.f32 %v156_v27, 0.0 }
 0x11f   :  { %238 = vmatmul.msk.f32.vlgmr.msra.gmra.mxu2 %vm134_vm1, %v158_v28 }
 0x1a2   :  { %v191_v30 = vpop.f32.mrf.mxu2 }
 0x1a3   :  { %v192_v31 = vadd.f32 %v248_v29, %v191_v30 }
 0x1a5   :  { %194 = vmax.xlane.f32.xlu0 %v192_v31 }
 0x218   :  { %v195_v32 = vpop.xlane.xlu0 %194 }
 0x219   :  { %v196_v33 = vsub.f32 %v192_v31, %v195_v32 }
 0x21b   :  { %v197_v34 = vmul.f32 1.442695, %v196_v33 }
 0x21d   :  { %249 = vpow2.f32 %v197_v34 }
 0x223   :  { %v250_v35 = vpop.eup %249 }
 0x224   :  { %199 = vadd.xlane.f32.xlu0 %v250_v35 }
 0x297   :  { %v200_v36 = vpop.xlane.xlu0 %199 }
 0x298   :  { %251 = vrcp.f32 %v200_v36  ;;  %v212_v40 = vand.u32 2147483648, %v200_v36  ;;  %v210_v42 = vand.u32 2147483647, %v200_v36  ;;  %vm206_vm3 = vweird.f32 %v200_v36 }
 0x29a   :  { %v213_v44 = vor.u32 1.1754944e-38, %v212_v40  ;;  %vm211_vm5 = vcmp.eq.f32.partialorder %v210_v42, 8.507059e+37 }
 0x29e   :  { %v252_v37 = vpop.eup %251 }
 0x29f   :  { %v202_v38 = vmul.f32 %v252_v37, %v200_v36  ;;  %vm207_vm2 = vweird.f32 %v252_v37 }
 0x2a0   :  { %vm208_vm4 = vmor %vm206_vm3, %vm207_vm2 }
 0x2a1   :  { %v203_v39 = vsub.f32 1.0, %v202_v38 }
 0x2a3   :  { %v204_v41 = vmul.f32 %v252_v37, %v203_v39 }
 0x2a5   :  { %v205_v43 = vadd.f32 %v252_v37, %v204_v41 }
 0x2a7   :  { %v209_v45 = vsel %vm208_vm4, %v252_v37, %v205_v43 }
 0x2a8   :  { %v214_v46 = vsel %vm211_vm5, %v213_v44, %v209_v45 }
 0x2a9   :  { %v215_v47 = vmul.f32 %v250_v35, %v214_v46 }
 0x2ab   :  { %216 = vst [vmem:[#allocation10] sm:$0xff] %v215_v47 }
 0x2ac   :  { %227 = dma.vmem_to_hbm [thread:$0]  %s223_s6, 128, %s225_s26, [#allocation4]  }
 0x2ad   :  { %379 = dma.done.wait [#allocation4], 128  }
 0x2ae   :  { %380 = vsyncadd [#allocation4], 4294967168 }
 0x2af   :  { %232 = vsyncpa [#allocation3], 1 }
 0x2b0   :  { %233 = vsyncpa [#allocation6], 1 }
 0x2b1   :  { %234 = vsyncpa [#allocation9], 1 }
 0x2b2   :  { %235 = vsyncpa [#allocation4], 1 }

</bundles_post_ra>
